<compile_context>
chip_gen: v6e
topology: v6e:2x2x1
jax: 0.10.0
libtpu: 0.0.40
codegen_flags: <defaults>
</compile_context>

<pallas_src>
import jax
import jax.numpy as jnp
from jax.experimental import pallas as pl
from jax.experimental.pallas import tpu as pltpu

_LANES = 128
_SUBLANES = 8
_MAX_TILE_ROWS = 2048            # (2048, 128) f32 = 1 MiB per operand tile
_MIN_GRID_STEPS = 4              # keep >= 4 steps so v7x's 2 TCs both get work
_XLA_FASTPATH_MAX_ELEMS = 1 << 16   # below this, plain fused XLA wins


def _sigma_kernel(params_ref, x_ref, sigma_ref):
    # params_ref: SMEM (2,) f32 = [w, b] of the logsigma Linear(1, 1)
    #             (scalar-prefetched once before the grid runs).
    w = params_ref[0]
    b = params_ref[1]
    # scale = exp(w * x + b): VPU multiply+add, EUP exp — hidden under HBM DMA.
    sigma_ref[...] = jnp.exp(x_ref[...] * w + b)


def instrument_model_hidden_forward(instrument, w_logsigma, b_logsigma,
                                    *, force_pallas=False):
    """instrument: (B, 1). w_logsigma: (1, 1). b_logsigma: (1,).

    Returns (mu, sigma), the parameters of Normal(loc=mu, scale=sigma).
    mu is the input passed through unchanged; sigma is float32 (B, 1).
    """
    B = instrument.shape[0]
    mu = instrument                                   # forward: mu = instrument
    w = w_logsigma.reshape(()).astype(jnp.float32)
    b = b_logsigma.reshape(()).astype(jnp.float32)

    # ---- Fast path: small batches are dominated by launch/copy overhead. ----
    if instrument.size < _XLA_FASTPATH_MAX_ELEMS and not force_pallas:
        sigma = jnp.exp(instrument.astype(jnp.float32) * w + b)
        return mu, sigma

    # ---- Pallas path: lane-dense (rows, 128) stream, partial last block. ----
    x_flat = instrument.reshape(-1).astype(jnp.float32)   # contiguous: free reshape
    pad = (-B) % _LANES                                    # <= 127 elements
    if pad:
        # NOTE: padded lanes compute exp(b) (finite unless b is huge) and are
        # sliced off below; only the last (partial) 128-wide row is ever padded.
        x_flat = jnp.pad(x_flat, (0, pad))
    rows = (B + pad) // _LANES
    x_slab = x_flat.reshape(rows, _LANES)

    # Tile rows: big enough to amortize per-step overhead, small enough to
    # give >= _MIN_GRID_STEPS steps on the "parallel" axis when possible.
    if rows <= _SUBLANES:
        tile_r = rows                                   # full-dim block is legal
    else:
        target = -(-rows // _MIN_GRID_STEPS)            # ceil(rows / 4)
        tile_r = -(-target // _SUBLANES) * _SUBLANES    # round up to sublane mult
        tile_r = max(_SUBLANES, min(_MAX_TILE_ROWS, min(tile_r, rows)))
    grid = (pl.cdiv(rows, tile_r),)                     # partial last block OK

    params = jnp.stack([w, b])                          # (2,) -> SMEM scalars

    sigma_slab = pl.pallas_call(
        _sigma_kernel,
        out_shape=jax.ShapeDtypeStruct((rows, _LANES), jnp.float32),
        grid_spec=pltpu.PrefetchScalarGridSpec(
            num_scalar_prefetch=1,                      # params -> SMEM, once
            grid=grid,
            in_specs=[
                pl.BlockSpec((tile_r, _LANES), lambda i, params: (i, 0)),
            ],
            out_specs=pl.BlockSpec((tile_r, _LANES), lambda i, params: (i, 0)),
        ),
        compiler_params=pltpu.CompilerParams(
            dimension_semantics=("parallel",)),         # batch tiles independent
    )(params, x_slab)

    sigma_flat = sigma_slab.reshape(-1)
    if pad:
        sigma_flat = sigma_flat[:B]
    sigma = sigma_flat.reshape(B, 1)
    # TODO(synk): the torch.distributions.Normal object itself is host-side
    # glue; the kernel produces its parameters (loc=mu, scale=sigma).
    return mu, sigma


def reference_forward(instrument, w_logsigma, b_logsigma):
    mu = instrument
    logsigma = instrument.astype(jnp.float32) @ w_logsigma.T + b_logsigma
    return mu, jnp.exp(logsigma)


if __name__ == "__main__":
    key = jax.random.PRNGKey(0)
    k_x, k_w, k_b, k_x2, k_x3 = jax.random.split(key, 5)

    # nn.Linear(1, 1): W (1, 1), b (1,)
    w_ls = jax.random.uniform(k_w, (1, 1), jnp.float32, -0.5, 0.5)
    b_ls = jax.random.uniform(k_b, (1,), jnp.float32, -0.5, 0.5)

    # 1) Small batch -> XLA fast path (semantics check).
    B = 8
    instrument = jax.random.normal(k_x, (B, 1), dtype=jnp.float32)
    mu, sigma = instrument_model_hidden_forward(instrument, w_ls, b_ls)
    jax.block_until_ready((mu, sigma))
    mu_ref, sigma_ref = reference_forward(instrument, w_ls, b_ls)
    assert mu.shape == (B, 1) and sigma.shape == (B, 1)
    assert jnp.allclose(mu, mu_ref, atol=1e-5, rtol=1e-5)
    assert jnp.allclose(sigma, sigma_ref, atol=1e-5, rtol=1e-5)

    # 2) Non-multiple-of-128 batch through the Pallas kernel (ragged tail,
    #    partial last block path).
    B2 = 517
    instrument2 = jax.random.normal(k_x2, (B2, 1), dtype=jnp.float32)
    mu2, sigma2 = instrument_model_hidden_forward(
        instrument2, w_ls, b_ls, force_pallas=True)
    jax.block_until_ready((mu2, sigma2))
    mu2_ref, sigma2_ref = reference_forward(instrument2, w_ls, b_ls)
    assert mu2.shape == (B2, 1) and sigma2.shape == (B2, 1)
    assert jnp.allclose(mu2, mu2_ref, atol=1e-5, rtol=1e-5)
    assert jnp.allclose(sigma2, sigma2_ref, atol=1e-5, rtol=1e-5)

    # 3) Multiple-of-128 batch through the Pallas kernel (no pad, free reshape).
    B3 = 1024
    instrument3 = jax.random.normal(k_x3, (B3, 1), dtype=jnp.float32)
    mu3, sigma3 = instrument_model_hidden_forward(
        instrument3, w_ls, b_ls, force_pallas=True)
    jax.block_until_ready((mu3, sigma3))
    mu3_ref, sigma3_ref = reference_forward(instrument3, w_ls, b_ls)
    assert mu3.shape == (B3, 1) and sigma3.shape == (B3, 1)
    assert jnp.allclose(mu3, mu3_ref, atol=1e-5, rtol=1e-5)
    assert jnp.allclose(sigma3, sigma3_ref, atol=1e-5, rtol=1e-5)

    print("KERNEL_OK")
</pallas_src>

<mosaic_0001>
module attributes {stable_mosaic.version = 11 : i64} {
  func.func @_sigma_kernel(%arg0: i32, %arg1: memref<2xf32, #tpu.memory_space<smem>>, %arg2: memref<5x128xf32, #tpu.memory_space<vmem>>, %arg3: memref<5x128xf32, #tpu.memory_space<vmem>>) attributes {dimension_semantics = [#tpu.dimension_semantics<parallel>], iteration_bounds = array<i64: 1>, scalar_prefetch = 1 : i64, scratch_operands = 0 : i64, tpu.core_type = #tpu.core_type<tc>, window_params = [{transform_indices = @transform_0, window_bounds = array<i64: 5, 128>}, {transform_indices = @transform_1, window_bounds = array<i64: 5, 128>}]} {
    %c0 = arith.constant 0 : index
    %0 = memref.load %arg1[%c0] : memref<2xf32, #tpu.memory_space<smem>>
    %c1 = arith.constant 1 : index
    %1 = memref.load %arg1[%c1] : memref<2xf32, #tpu.memory_space<smem>>
    %c0_0 = arith.constant 0 : index
    %c0_1 = arith.constant 0 : index
    %2 = vector.load %arg2[%c0_0, %c0_1] : memref<5x128xf32, #tpu.memory_space<vmem>>, vector<5x128xf32>
    %3 = vector.broadcast %0 : f32 to vector<5x128xf32>
    %4 = arith.mulf %2, %3 : vector<5x128xf32>
    %5 = vector.broadcast %1 : f32 to vector<5x128xf32>
    %6 = arith.addf %4, %5 : vector<5x128xf32>
    %7 = math.exp %6 : vector<5x128xf32>
    %c0_2 = arith.constant 0 : index
    %c0_3 = arith.constant 0 : index
    %8 = vector.load %arg3[%c0_2, %c0_3] : memref<5x128xf32, #tpu.memory_space<vmem>>, vector<5x128xf32>
    tpu.vector_store %arg3[%c0_2, %c0_3], %7 {strides = array<i32>} : memref<5x128xf32, #tpu.memory_space<vmem>>, vector<5x128xf32>,
    return
  }
  func.func @transform_0(%arg0: i32, %arg1: memref<2xf32, #tpu.memory_space<smem>>) -> (i32, i32) {
    %c0_i32 = arith.constant 0 : i32
    %c0_i32_0 = arith.constant 0 : i32
    return %arg0, %c0_i32 : i32, i32
  }
  func.func @transform_1(%arg0: i32, %arg1: memref<2xf32, #tpu.memory_space<smem>>) -> (i32, i32) {
    %c0_i32 = arith.constant 0 : i32
    %c0_i32_0 = arith.constant 0 : i32
    return %arg0, %c0_i32 : i32, i32
  }
}

</mosaic_0001>

<bundles_post_ra>
// kernel: tpu_custom_call.1
= control target key start
LH: loop header
LB: loop body
LE: loop exit
PB: predicated region body
PF: predicated region fallthrough
CT: control target
= control target key end

     0   :  { %s111_s9 = smov [#allocation3]   ;;  %s138_s0 = inlined_call_operand.hbm [shape: f32[2], index: 0, kind: input, shape index: {}]   ;;  %s139_s1 = inlined_call_operand.hbm [shape: f32[5,128], index: 1, kind: input, shape index: {}]   ;;  %s140_s2 = inlined_call_operand.hbm [shape: f32[5,128], index: 2, kind: output, shape index: {}]  }
   0x1   :  { %8 = dma.hbm_to_smem %s138_s0, 16, %s111_s9, [#allocation2] }
   0x2   :  { %105 = dma.done.wait [#allocation2], 16 }
   0x3   :  { %106 = vsyncadd [#allocation2], 4294967280 }
   0x4   :  { %10 = sfence }
   0x5   :  { %11 = vsyncpa [#allocation5], 0 }
   0x6   :  { %12 = vsyncpa [#allocation6], 0  ;;  %s112_s12 = smov [#allocation4]  }
   0x7   :  { %s19_s13 = sshll.u32 %s112_s12, 4  ;;  %s20_s13 = int_to_ptr.vmem [resolvable:$true] %s19_s13 }
   0x8   :  { %s73_s14 = scalar_lea.vmem %s20_s13, 128  ;;  %p78_p1 = scmp.lt.s32.totalorder %s20_s13, %s20_s13 }
   0x9   :  { %p74_p0 = scmp.ne.s32.totalorder %s20_s13, %s73_s14  ;;  %p79_p2 = scmp.lt.s32.totalorder %s73_s14, %s73_s14 }
   0xb   :  { %p80_p3 = por %p79_p2, %p78_p1 }
   0xd   :  { %p81_p4 = pnand %p80_p3, %p74_p0 }
   0xf   :  { %84 = shalt.err (!%p81_p4)
}
  0x10   :  { %22 = dma.hbm_to_vmem [thread:$0]  %s139_s1, 128, %s20_s13, [#allocation5]  }
  0x11   :  { %107 = dma.done.wait [#allocation5], 128  }
  0x12   :  { %108 = vsyncadd [#allocation5], 4294967168  ;;  %s26_s0 = sld [smem:[#allocation3]]  ;;  %v28_v0 = vld [vmem:[#allocation4] sm:$0x1f]  ;;  %s113_s18 = smov [#allocation7]  }
  0x13   :  { %s51_s17 = sld [smem:[#allocation3 + $0x1]]  ;;  %s42_s19 = sshll.u32 %s113_s18, 4  ;;  %s43_s19 = int_to_ptr.vmem [resolvable:$true] %s42_s19 }
  0x14   :  { %s85_s20 = scalar_lea.vmem %s43_s19, 128  ;;  %p90_p6 = scmp.lt.s32.totalorder %s43_s19, %s43_s19 }
  0x15   :  { %p86_p5 = scmp.ne.s32.totalorder %s43_s19, %s85_s20  ;;  %p91_p7 = scmp.lt.s32.totalorder %s85_s20, %s85_s20 }
  0x17   :  { %p92_p8 = por %p91_p7, %p90_p6 }
  0x18   :  { %v29_v1 = vstv %s26_s0 }
  0x19   :  { %v30_v2 = vmul.f32 %v29_v1, %v28_v0  ;;  %v31_v3 = vstv %s51_s17  ;;  %p93_p9 = pnand %p92_p8, %p86_p5 }
  0x1b   :  { %v32_v4 = vadd.f32 %v31_v3, %v30_v2 }
  0x1d   :  { %v33_v5 = vmul.f32 1.442695, %v32_v4 }
  0x1f   :  { %55 = vpow2.f32 %v33_v5 }
  0x2c   :  { %v56_v6 = vpop.eup %55 }
  0x2d   :  { %35 = vst [vmem:[#allocation7] sm:$0x1f] %v56_v6 }
  0x2e   :  { %96 = shalt.err (!%p93_p9)
}
  0x2f   :  { %45 = dma.vmem_to_hbm [thread:$0]  %s43_s19, 128, %s140_s2, [#allocation6]  }
  0x30   :  { %109 = dma.done.wait [#allocation6], 128  }
  0x31   :  { %110 = vsyncadd [#allocation6], 4294967168 }
  0x32   :  { %49 = vsyncpa [#allocation5], 1 }
  0x33   :  { %50 = vsyncpa [#allocation6], 1 }

</bundles_post_ra>
